<compile_context>
chip_gen: v7x
topology: tpu7x:2x2x1
jax: 0.10.0
libtpu: 0.0.40
codegen_flags: <defaults>
</compile_context>

<pallas_src>
import jax
import jax.numpy as jnp
from jax.experimental import pallas as pl
from jax.experimental.pallas import tpu as pltpu

K_IN = 28 * 28      # 784; kept unpadded (full-array last dim is legal)
H1 = 256
H2 = 128
N_OUT = 10
N_PAD = 128         # lane-dense output store; wrapper slices [:, :10]


def _round_up(x, m):
    return ((x + m - 1) // m) * m


def _mlp_kernel(x_ref, w1_ref, b1_ref, w2_ref, b2_ref, w3_ref, b3_ref, o_ref):
    # x tile arrives in its native dtype; bf16 cast happens here on the VPU
    # (free -- the kernel is HBM-bound).  Three MXU matmuls with f32
    # accumulation; bias-add + ReLU epilogues stay in f32 (safe on v5e, which
    # has no bf16 VPU path); bf16 recast only to feed the next matmul.
    x = x_ref[...].astype(jnp.bfloat16)
    h1 = jnp.dot(x, w1_ref[...], preferred_element_type=jnp.float32)
    h1 = jnp.maximum(h1 + b1_ref[...], 0.0)                       # (TB, 256) f32
    h2 = jnp.dot(h1.astype(jnp.bfloat16), w2_ref[...],
                 preferred_element_type=jnp.float32)
    h2 = jnp.maximum(h2 + b2_ref[...], 0.0)                       # (TB, 128) f32
    h3 = jnp.dot(h2.astype(jnp.bfloat16), w3_ref[...],
                 preferred_element_type=jnp.float32)
    o_ref[...] = (h3 + b3_ref[...]).astype(o_ref.dtype)           # (TB, 128) bf16


def net_forward(x, params, tile_b=2048):
    """x: (B, 1, 28, 28) or (B, 784), any float dtype. Returns logits (B, 10) f32."""
    w1, b1, w2, b2, w3, b3 = params

    # == x.view(-1, 784): contiguous reshape, metadata-only, no HBM pass.
    x2d = x.reshape(-1, K_IN)
    B = x2d.shape[0]

    # Tile choice: multiple of 16 sublanes (bf16 packing); small batches are
    # split into ~2 tiles so the "parallel" batch axis can use both
    # TensorCores on v7x; cap at tile_b (per-step overhead vs VMEM tradeoff).
    tb = max(16, min(tile_b, _round_up(pl.cdiv(B, 2), 16)))
    grid = (pl.cdiv(B, tb),)          # edge block masked; no batch-pad copy

    # Weights: bf16 for the MXU (tiny one-time casts); biases stay f32.
    # fc3 weight/bias output-padded 10 -> 128 with zeros (sliced off below).
    w1b = w1.astype(jnp.bfloat16)
    w2b = w2.astype(jnp.bfloat16)
    w3p = jnp.pad(w3.astype(jnp.float32),
                  ((0, 0), (0, N_PAD - N_OUT))).astype(jnp.bfloat16)
    b1f = b1.astype(jnp.float32).reshape(1, H1)
    b2f = b2.astype(jnp.float32).reshape(1, H2)
    b3p = jnp.pad(b3.astype(jnp.float32).reshape(1, N_OUT),
                  ((0, 0), (0, N_PAD - N_OUT)))

    const = lambda i: (0, 0)    # weights/biases: VMEM-resident, DMA'd once
    out = pl.pallas_call(
        _mlp_kernel,
        out_shape=jax.ShapeDtypeStruct((B, N_PAD), jnp.bfloat16),
        grid=grid,
        in_specs=[
            pl.BlockSpec((tb, K_IN), lambda i: (i, 0)),   # x tile, native dtype
            pl.BlockSpec((K_IN, H1), const),              # w1
            pl.BlockSpec((1, H1), const),                 # b1
            pl.BlockSpec((H1, H2), const),                # w2
            pl.BlockSpec((1, H2), const),                 # b2
            pl.BlockSpec((H2, N_PAD), const),             # w3 (out-padded)
            pl.BlockSpec((1, N_PAD), const),              # b3 (out-padded)
        ],
        out_specs=pl.BlockSpec((tb, N_PAD), lambda i: (i, 0)),
        compiler_params=pltpu.CompilerParams(
            dimension_semantics=("parallel",),
            vmem_limit_bytes=40 * 1024 * 1024),
    )(x2d, w1b, b1f, w2b, b2f, w3p, b3p)

    # Lane slice + upcast to match the module's (B, 10) f32 output.  A fused
    # consumer (e.g. cross-entropy) should take the padded bf16 slab directly.
    return out[:, :N_OUT].astype(jnp.float32)


def init_params(key):
    """Deterministic parameters matching nn.Linear shapes.

    PyTorch stores weight as (out, in); we keep the (in, out) transpose so the
    kernel computes x @ W directly (mathematically identical to x @ W_pt.T).
    Biases are (1, out) rows.  Stored in f32; the wrapper handles bf16/padding.
    """
    dims = [(K_IN, H1), (H1, H2), (H2, N_OUT)]
    params = []
    for fan_in, fan_out in dims:
        kw, kb, key = jax.random.split(key, 3)
        bound = 1.0 / jnp.sqrt(fan_in)
        w = jax.random.uniform(kw, (fan_in, fan_out), jnp.float32, -bound, bound)
        b = jax.random.uniform(kb, (1, fan_out), jnp.float32, -bound, bound)
        params += [w, b]
    return tuple(params)


def _reference(x, params):
    w1, b1, w2, b2, w3, b3 = params
    x = x.reshape(-1, K_IN).astype(jnp.float32)
    h1 = jnp.maximum(x @ w1 + b1, 0.0)
    h2 = jnp.maximum(h1 @ w2 + b2, 0.0)
    return h2 @ w3 + b3


if __name__ == "__main__":
    key = jax.random.PRNGKey(0)
    k_x, k_x2, k_p = jax.random.split(key, 3)
    params = init_params(k_p)

    # Small NCHW Fashion-MNIST-shaped batch (single edge-masked tile).
    x_small = jax.random.normal(k_x, (2, 1, 28, 28), jnp.float32)
    out_small = jax.block_until_ready(net_forward(x_small, params))
    ref_small = _reference(x_small, params)
    assert out_small.shape == (2, N_OUT), out_small.shape
    # bf16 matmul inputs/output with f32 accumulation -> relaxed tolerance.
    assert jnp.allclose(out_small, ref_small, atol=3e-2, rtol=3e-2), \
        "mismatch vs reference (small batch)"

    # Batch not divisible by the tile: exercises the 2-tile + masked-edge path.
    x_big = jax.random.normal(k_x2, (300, 1, 28, 28), jnp.float32)
    out_big = jax.block_until_ready(net_forward(x_big, params))
    ref_big = _reference(x_big, params)
    assert out_big.shape == (300, N_OUT), out_big.shape
    assert jnp.allclose(out_big, ref_big, atol=3e-2, rtol=3e-2), \
        "mismatch vs reference (large batch)"

    print("KERNEL_OK")
</pallas_src>

<mosaic_0001>
module attributes {stable_mosaic.version = 11 : i64} {
  func.func @_mlp_kernel(%arg0: i32, %arg1: memref<16x784xf32, #tpu.memory_space<vmem>>, %arg2: memref<784x256xbf16, #tpu.memory_space<vmem>>, %arg3: memref<1x256xf32, #tpu.memory_space<vmem>>, %arg4: memref<256x128xbf16, #tpu.memory_space<vmem>>, %arg5: memref<1x128xf32, #tpu.memory_space<vmem>>, %arg6: memref<128x128xbf16, #tpu.memory_space<vmem>>, %arg7: memref<1x128xf32, #tpu.memory_space<vmem>>, %arg8: memref<16x128xbf16, #tpu.memory_space<vmem>>) attributes {dimension_semantics = [#tpu.dimension_semantics<parallel>], iteration_bounds = array<i64: 1>, scalar_prefetch = 0 : i64, scratch_operands = 0 : i64, tpu.core_type = #tpu.core_type<tc>, window_params = [{transform_indices = @transform_0, window_bounds = array<i64: 16, 784>}, {pipeline_mode = #tpu.pipeline_mode<synchronous>, transform_indices = @transform_1, window_bounds = array<i64: 784, 256>}, {pipeline_mode = #tpu.pipeline_mode<synchronous>, transform_indices = @transform_2, window_bounds = array<i64: 1, 256>}, {pipeline_mode = #tpu.pipeline_mode<synchronous>, transform_indices = @transform_3, window_bounds = array<i64: 256, 128>}, {pipeline_mode = #tpu.pipeline_mode<synchronous>, transform_indices = @transform_4, window_bounds = array<i64: 1, 128>}, {pipeline_mode = #tpu.pipeline_mode<synchronous>, transform_indices = @transform_5, window_bounds = array<i64: 128, 128>}, {pipeline_mode = #tpu.pipeline_mode<synchronous>, transform_indices = @transform_6, window_bounds = array<i64: 1, 128>}, {transform_indices = @transform_7, window_bounds = array<i64: 16, 128>}]} {
    %c0 = arith.constant 0 : index
    %c0_0 = arith.constant 0 : index
    %0 = vector.load %arg1[%c0, %c0_0] : memref<16x784xf32, #tpu.memory_space<vmem>>, vector<16x784xf32>
    %1 = arith.truncf %0 : vector<16x784xf32> to vector<16x784xbf16>
    %c0_1 = arith.constant 0 : index
    %c0_2 = arith.constant 0 : index
    %2 = vector.load %arg2[%c0_1, %c0_2] : memref<784x256xbf16, #tpu.memory_space<vmem>>, vector<784x256xbf16>
    %cst = arith.constant dense<0.000000e+00> : vector<16x256xf32>
    %3 = tpu.matmul %1, %2, %cst {dimension_numbers = #tpu.dot_dimension_numbers<[1], [0], [0], [1], [0, 0, 1, 1], [], []>} : vector<16x784xbf16>, vector<784x256xbf16>, vector<16x256xf32> -> vector<16x256xf32>
    %c0_3 = arith.constant 0 : index
    %c0_4 = arith.constant 0 : index
    %4 = vector.load %arg3[%c0_3, %c0_4] : memref<1x256xf32, #tpu.memory_space<vmem>>, vector<1x256xf32>
    %5 = vector.broadcast %4 : vector<1x256xf32> to vector<16x256xf32>
    %6 = arith.addf %3, %5 : vector<16x256xf32>
    %cst_5 = arith.constant 0.000000e+00 : f32
    %7 = vector.broadcast %cst_5 : f32 to vector<16x256xf32>
    %8 = arith.maximumf %6, %7 : vector<16x256xf32>
    %9 = arith.truncf %8 : vector<16x256xf32> to vector<16x256xbf16>
    %c0_6 = arith.constant 0 : index
    %c0_7 = arith.constant 0 : index
    %10 = vector.load %arg4[%c0_6, %c0_7] : memref<256x128xbf16, #tpu.memory_space<vmem>>, vector<256x128xbf16>
    %cst_8 = arith.constant dense<0.000000e+00> : vector<16x128xf32>
    %11 = tpu.matmul %9, %10, %cst_8 {dimension_numbers = #tpu.dot_dimension_numbers<[1], [0], [0], [1], [0, 0, 1, 1], [], []>} : vector<16x256xbf16>, vector<256x128xbf16>, vector<16x128xf32> -> vector<16x128xf32>
    %c0_9 = arith.constant 0 : index
    %c0_10 = arith.constant 0 : index
    %12 = vector.load %arg5[%c0_9, %c0_10] : memref<1x128xf32, #tpu.memory_space<vmem>>, vector<1x128xf32>
    %13 = vector.broadcast %12 : vector<1x128xf32> to vector<16x128xf32>
    %14 = arith.addf %11, %13 : vector<16x128xf32>
    %cst_11 = arith.constant 0.000000e+00 : f32
    %15 = vector.broadcast %cst_11 : f32 to vector<16x128xf32>
    %16 = arith.maximumf %14, %15 : vector<16x128xf32>
    %17 = arith.truncf %16 : vector<16x128xf32> to vector<16x128xbf16>
    %c0_12 = arith.constant 0 : index
    %c0_13 = arith.constant 0 : index
    %18 = vector.load %arg6[%c0_12, %c0_13] : memref<128x128xbf16, #tpu.memory_space<vmem>>, vector<128x128xbf16>
    %cst_14 = arith.constant dense<0.000000e+00> : vector<16x128xf32>
    %19 = tpu.matmul %17, %18, %cst_14 {dimension_numbers = #tpu.dot_dimension_numbers<[1], [0], [0], [1], [0, 0, 1, 1], [], []>} : vector<16x128xbf16>, vector<128x128xbf16>, vector<16x128xf32> -> vector<16x128xf32>
    %c0_15 = arith.constant 0 : index
    %c0_16 = arith.constant 0 : index
    %20 = vector.load %arg7[%c0_15, %c0_16] : memref<1x128xf32, #tpu.memory_space<vmem>>, vector<1x128xf32>
    %21 = vector.broadcast %20 : vector<1x128xf32> to vector<16x128xf32>
    %22 = arith.addf %19, %21 : vector<16x128xf32>
    %23 = arith.truncf %22 : vector<16x128xf32> to vector<16x128xbf16>
    %c0_17 = arith.constant 0 : index
    %c0_18 = arith.constant 0 : index
    %24 = vector.load %arg8[%c0_17, %c0_18] : memref<16x128xbf16, #tpu.memory_space<vmem>>, vector<16x128xbf16>
    tpu.vector_store %arg8[%c0_17, %c0_18], %23 {strides = array<i32>} : memref<16x128xbf16, #tpu.memory_space<vmem>>, vector<16x128xbf16>,
    return
  }
  func.func @transform_0(%arg0: i32) -> (i32, i32) {
    %c0_i32 = arith.constant 0 : i32
    %c0_i32_0 = arith.constant 0 : i32
    return %arg0, %c0_i32 : i32, i32
  }
  func.func @transform_1(%arg0: i32) -> (i32, i32) {
    %c0_i32 = arith.constant 0 : i32
    %c0_i32_0 = arith.constant 0 : i32
    %c0_i32_1 = arith.constant 0 : i32
    return %c0_i32, %c0_i32_0 : i32, i32
  }
  func.func @transform_2(%arg0: i32) -> (i32, i32) {
    %c0_i32 = arith.constant 0 : i32
    %c0_i32_0 = arith.constant 0 : i32
    %c0_i32_1 = arith.constant 0 : i32
    return %c0_i32, %c0_i32_0 : i32, i32
  }
  func.func @transform_3(%arg0: i32) -> (i32, i32) {
    %c0_i32 = arith.constant 0 : i32
    %c0_i32_0 = arith.constant 0 : i32
    %c0_i32_1 = arith.constant 0 : i32
    return %c0_i32, %c0_i32_0 : i32, i32
  }
  func.func @transform_4(%arg0: i32) -> (i32, i32) {
    %c0_i32 = arith.constant 0 : i32
    %c0_i32_0 = arith.constant 0 : i32
    %c0_i32_1 = arith.constant 0 : i32
    return %c0_i32, %c0_i32_0 : i32, i32
  }
  func.func @transform_5(%arg0: i32) -> (i32, i32) {
    %c0_i32 = arith.constant 0 : i32
    %c0_i32_0 = arith.constant 0 : i32
    %c0_i32_1 = arith.constant 0 : i32
    return %c0_i32, %c0_i32_0 : i32, i32
  }
  func.func @transform_6(%arg0: i32) -> (i32, i32) {
    %c0_i32 = arith.constant 0 : i32
    %c0_i32_0 = arith.constant 0 : i32
    %c0_i32_1 = arith.constant 0 : i32
    return %c0_i32, %c0_i32_0 : i32, i32
  }
  func.func @transform_7(%arg0: i32) -> (i32, i32) {
    %c0_i32 = arith.constant 0 : i32
    %c0_i32_0 = arith.constant 0 : i32
    return %arg0, %c0_i32 : i32, i32
  }
}

</mosaic_0001>

<bundles_post_ra>
// kernel: tpu_custom_call.1
= control target key start
LH: loop header
LB: loop body
LE: loop exit
PB: predicated region body
PF: predicated region fallthrough
CT: control target
= control target key end

     0   :  { %12 = vsyncpa [#allocation3], 0  ;;  %s2148_s0 = inlined_call_operand.hbm [shape: f32[2,784], index: 0, kind: input, shape index: {}]   ;;  %s2149_s1 = inlined_call_operand.hbm [shape: bf16[784,256], index: 1, kind: input, shape index: {}]   ;;  %s2150_s2 = inlined_call_operand.vmem [shape: f32[1,256], index: 2, kind: input, shape index: {}]   ;;  %s2151_s3 = inlined_call_operand.hbm [shape: bf16[256,128], index: 3, kind: input, shape index: {}]   ;;  %s2152_s4 = inlined_call_operand.vmem [shape: f32[1,128], index: 4, kind: input, shape index: {}]   ;;  %s2153_s5 = inlined_call_operand.hbm [shape: bf16[128,128], index: 5, kind: input, shape index: {}]   ;;  %s2154_s6 = inlined_call_operand.vmem [shape: f32[1,128], index: 6, kind: input, shape index: {}]   ;;  %s2155_s7 = inlined_call_operand.hbm [shape: bf16[2,128], index: 7, kind: output, shape index: {}]  }
   0x1   :  { %13 = vsyncpa [#allocation6], 0 }
   0x2   :  { %14 = vsyncpa [#allocation9], 0 }
   0x3   :  { %15 = vsyncpa [#allocation4], 0 }
   0x4   :  { %20 = vsyncadd [#allocation3], 1568  ;;  %s1965_s24 = smov [#allocation5]   ;;  %s1847_s28 = scalar_lea.hbm %s2149_s1, 12544 }
   0x5   :  { %s33_s25 = sshll.u32 %s1965_s24, 4  ;;  %p1848_p0 = scmp.ne.s32.totalorder %s2149_s1, %s1847_s28  ;;  %s34_s25 = int_to_ptr.vmem [resolvable:$true] %s33_s25 }
   0x6   :  { %p1851_p1 = scmp.lt.u32.totalorder %s1847_s28, %s2149_s1 }
   0x8   :  { %p1853_p2 = pnand %p1851_p1, %p1848_p0 }
   0xa   :  { %1856 = shalt.err (!%p1853_p2)
}
   0xb   :  { %s1857_s10 = scalar_lea.vmem %s34_s25, 12544  ;;  %p1862_p4 = scmp.lt.s32.totalorder %s34_s25, %s34_s25 }
   0xc   :  { %p1858_p3 = scmp.ne.s32.totalorder %s34_s25, %s1857_s10  ;;  %p1863_p5 = scmp.lt.s32.totalorder %s1857_s10, %s1857_s10 }
   0xe   :  { %p1864_p6 = por %p1863_p5, %p1862_p4 }
  0x10   :  { %p1865_p7 = pnand %p1864_p6, %p1858_p3 }
  0x12   :  { %1868 = shalt.err (!%p1865_p7)
}
  0x13   :  { %s1966_s11 = smov 128   ;;  %s1967_s12 = smov 8  }
  0x14   :  { %39 = dma.hbm_to_vmem [thread:$0]  %s2149_s1, 12544, %s34_s25, [#allocation6], %s1966_s11, %s1966_s11, %s1967_s12  }
  0x15   :  { %s1968_s15 = smov [#allocation2]   ;;  %s1869_s19 = scalar_lea.hbm %s2148_s0, 224 }
  0x16   :  { %s21_s16 = sshll.u32 %s1968_s15, 4  ;;  %p1870_p8 = scmp.ne.s32.totalorder %s2148_s0, %s1869_s19  ;;  %s22_s16 = int_to_ptr.vmem [resolvable:$true] %s21_s16 }
  0x17   :  { %p1873_p9 = scmp.lt.u32.totalorder %s1869_s19, %s2148_s0 }
  0x19   :  { %p1875_p10 = pnand %p1873_p9, %p1870_p8 }
  0x1b   :  { %1878 = shalt.err (!%p1875_p10)
}
  0x1c   :  { %s1879_s24 = scalar_lea.vmem %s22_s16, 224  ;;  %s1883_s1 = scalar_lea.vmem %s22_s16, 1792 }
  0x1d   :  { %p1880_p11 = scmp.ne.s32.totalorder %s22_s16, %s1879_s24  ;;  %p1884_p12 = scmp.lt.s32.totalorder %s22_s16, %s22_s16 }
  0x1e   :  { %p1885_p13 = scmp.lt.s32.totalorder %s1883_s1, %s1879_s24 }
  0x20   :  { %p1886_p0 = por %p1885_p13, %p1884_p12 }
  0x22   :  { %p1887_p1 = pnand %p1886_p0, %p1880_p11 }
  0x24   :  { %1890 = shalt.err (!%p1887_p1)
}
  0x25   :  { %s1969_s25 = smov 224   ;;  %s1970_s26 = smov 14  }
  0x26   :  { %27 = dma.hbm_to_vmem [thread:$0]  %s2148_s0, 224, %s22_s16, [#allocation3], %s1969_s25, %s1969_s25, %s1970_s26  }
  0x27   :  { %s1971_s29 = smov [#allocation7]   ;;  %s1891_s10 = scalar_lea.hbm %s2151_s3, 2048 }
  0x28   :  { %s47_s30 = sshll.u32 %s1971_s29, 4  ;;  %p1892_p2 = scmp.ne.s32.totalorder %s2151_s3, %s1891_s10  ;;  %s48_s30 = int_to_ptr.vmem [resolvable:$true] %s47_s30 }
  0x29   :  { %p1895_p3 = scmp.lt.u32.totalorder %s1891_s10, %s2151_s3 }
  0x2b   :  { %p1897_p4 = pnand %p1895_p3, %p1892_p2 }
  0x2d   :  { %1900 = shalt.err (!%p1897_p4)
}
  0x2e   :  { %s1901_s15 = scalar_lea.vmem %s48_s30, 2048  ;;  %p1906_p6 = scmp.lt.s32.totalorder %s48_s30, %s48_s30 }
  0x2f   :  { %p1902_p5 = scmp.ne.s32.totalorder %s48_s30, %s1901_s15  ;;  %p1907_p7 = scmp.lt.s32.totalorder %s1901_s15, %s1901_s15 }
  0x31   :  { %p1908_p8 = por %p1907_p7, %p1906_p6 }
  0x33   :  { %p1909_p9 = pnand %p1908_p8, %p1902_p5 }
  0x35   :  { %1912 = shalt.err (!%p1909_p9)
}
  0x36   :  { %s1972_s0 = smov 64   ;;  %s1973_s16 = smov 4  }
  0x37   :  { %53 = dma.hbm_to_vmem [thread:$0]  %s2151_s3, 2048, %s48_s30, [#allocation6], %s1972_s0, %s1972_s0, %s1973_s16  }
  0x38   :  { %s1974_s19 = smov [#allocation8]   ;;  %s1913_s23 = scalar_lea.hbm %s2153_s5, 1024 }
  0x39   :  { %s61_s20 = sshll.u32 %s1974_s19, 4  ;;  %p1914_p10 = scmp.ne.s32.totalorder %s2153_s5, %s1913_s23  ;;  %s62_s20 = int_to_ptr.vmem [resolvable:$true] %s61_s20 }
  0x3a   :  { %p1917_p11 = scmp.lt.u32.totalorder %s1913_s23, %s2153_s5 }
  0x3c   :  { %p1919_p12 = pnand %p1917_p11, %p1914_p10 }
  0x3e   :  { %1922 = shalt.err (!%p1919_p12)
}
  0x3f   :  { %s1923_s27 = scalar_lea.vmem %s62_s20, 1024  ;;  %p1928_p0 = scmp.lt.s32.totalorder %s62_s20, %s62_s20 }
  0x40   :  { %p1924_p13 = scmp.ne.s32.totalorder %s62_s20, %s1923_s27  ;;  %p1929_p1 = scmp.lt.s32.totalorder %s1923_s27, %s1923_s27 }
  0x42   :  { %p1930_p2 = por %p1929_p1, %p1928_p0 }
  0x44   :  { %p1931_p3 = pnand %p1930_p2, %p1924_p13 }
  0x46   :  { %1934 = shalt.err (!%p1931_p3)
}
  0x47   :  { %67 = dma.hbm_to_vmem [thread:$0]  %s2153_s5, 1024, %s62_s20, [#allocation9], %s1972_s0, %s1972_s0, %s1973_s16  }
  0x48   :  { %1957 = dma.done.wait [#allocation3], 1792  }
  0x49   :  { %1958 = vsyncadd [#allocation3], 4294965504 }
  0x4a   :  { %1959 = dma.done.wait [#allocation6], 14592  }
  0x4b   :  { %1960 = vsyncadd [#allocation6], 4294952704 }
  0x4c   :  { %1961 = dma.done.wait [#allocation9], 1024  }
  0x4d   :  { %1962 = vsyncadd [#allocation9], 4294966272  ;;  %v1652_v0 = vld [vmem:[#allocation5 + $0x104] ss:$8 sps:$4 sm:$0xff]   ;;  %v1654_v1 = vld [vmem:[#allocation5 + $0x100] ss:$8 sps:$4 sm:$0xff]   ;;  %v122_v11 = vlaneseq }
  0x4e   :  { %925 = vmatprep.subr.bf16.mxu0 %v1652_v0  ;;  %v1655_v2 = vld [vmem:[#allocation5 + $0x114] ss:$8 sps:$4 sm:$0xff]   ;;  %v1657_v3 = vld [vmem:[#allocation5 + $0x110] ss:$8 sps:$4 sm:$0xff]   ;;  %v1658_v4 = vld [vmem:[#allocation5 + $0x124] ss:$8 sps:$4 sm:$0xff]  }
  0x4f   :  { %926 = vmatpush1.bf16.msra.mxu0 %v1654_v1  ;;  %v1660_v5 = vld [vmem:[#allocation5 + $0x120] ss:$8 sps:$4 sm:$0xff]   ;;  %v1661_v6 = vld [vmem:[#allocation5 + $0x134] ss:$8 sps:$4 sm:$0xff]   ;;  %v1663_v7 = vld [vmem:[#allocation5 + $0x130] ss:$8 sps:$4 sm:$0xff]  }
  0x50   :  { %927 = vmatprep.subr.bf16.mxu0 %v1655_v2  ;;  %v1664_v8 = vld [vmem:[#allocation5 + $0x144] ss:$8 sps:$4 sm:$0xff]   ;;  %v1975_v9 = vmov 1983009808   ;;  %v1666_v12 = vld [vmem:[#allocation5 + $0x140] ss:$8 sps:$4 sm:$0xff]  }
  0x51   :  { %v120_v10 = vunpack.c.l.s4 %v1975_v9  ;;  %v1667_v13 = vld [vmem:[#allocation5 + $0x154] ss:$8 sps:$4 sm:$0xff]   ;;  %v2071_v15 = vshrl.u32 %v122_v11, 7  ;;  %v1669_v16 = vld [vmem:[#allocation5 + $0x150] ss:$8 sps:$4 sm:$0xff]   ;;  %vm878_vm0 = vcmask 130048  }
  0x52   :  { %v1670_v17 = vld [vmem:[#allocation5 + $0x164] ss:$8 sps:$4 sm:$0xff]   ;;  %v1672_v18 = vld [vmem:[#allocation5 + $0x160] ss:$8 sps:$4 sm:$0xff]   ;;  %v1673_v19 = vld [vmem:[#allocation5 + $0x174] ss:$8 sps:$4 sm:$0xff]  }
  0x53   :  { %928 = vmatpush1.bf16.msra.mxu0 %v1657_v3  ;;  %v121_v14 = vunpack.c.0.s8 %v120_v10  ;;  %v1700_v21 = vld [vmem:[#allocation2 + $0x4] ss:$14 sps:$4 sm:$0xff]   ;;  %v1702_v22 = vld [vmem:[#allocation2 + $0x20] ss:$14 sps:$4 sm:$0xff]   ;;  %v1704_v23 = vld [vmem:[#allocation2 + $0x3c] ss:$14 sps:$4 sm:$0xff]  }
  0x54   :  { %929 = vmatprep.subr.bf16.mxu0 %v1658_v4  ;;  %v1706_v24 = vld [vmem:[#allocation2 + $0x58] ss:$14 sps:$4 sm:$0xff]   ;;  %v1676_v29 = vld [vmem:[#allocation5 + $0x184] ss:$8 sps:$4 sm:$0xff]   ;;  %vm1978_vm1 = vmmov 0  }
  0x55   :  { %v2074_v20 = vsub.s32 %v121_v14, %v2071_v15  ;;  %v1675_v28 = vld [vmem:[#allocation5 + $0x170] ss:$8 sps:$4 sm:$0xff]   ;;  %v1714_v32 = vld [vmem:[#allocation5 + $0x4] ss:$8 sps:$4 sm:$0xff]   ;;  %v1678_v34 = vld [vmem:[#allocation5 + $0x180] ss:$8 sps:$4 sm:$0xff]  }
  0x56   :  { %882 = vmatprep.subr.bf16.mxu1 %v1714_v32  ;;  %v1719_v35 = vld [vmem:[#allocation5] ss:$8 sps:$4 sm:$0xff]   ;;  %v1720_v37 = vld [vmem:[#allocation5 + $0x14] ss:$8 sps:$4 sm:$0xff]   ;;  %v1725_v39 = vld [vmem:[#allocation5 + $0x10] ss:$8 sps:$4 sm:$0xff]  }
  0x57   :  { %930 = vmatpush1.bf16.msra.mxu0 %v1660_v5  ;;  %v2077_v25 = vrot.slane %v1700_v21, %v2074_v20  ;;  %v2080_v26 = vrot.slane %v1702_v22, %v2074_v20  ;;  %v2083_v27 = vrot.slane %v1704_v23, %v2074_v20  ;;  %v2086_v30 = vrot.slane %v1706_v24, %v2074_v20  ;;  %v1679_v38 = vld [vmem:[#allocation5 + $0x194] ss:$8 sps:$4 sm:$0xff]   ;;  %v1726_v40 = vld [vmem:[#allocation5 + $0x24] ss:$8 sps:$4 sm:$0xff]   ;;  %v1681_v41 = vld [vmem:[#allocation5 + $0x190] ss:$8 sps:$4 sm:$0xff]  }
  0x58   :  { %931 = vmatprep.subr.bf16.mxu0 %v1661_v6  ;;  %883 = vmatpush1.bf16.msra.mxu1 %v1719_v35  ;;  %v1682_v42 = vld [vmem:[#allocation5 + $0x1a4] ss:$8 sps:$4 sm:$0xff]   ;;  %v1731_v43 = vld [vmem:[#allocation5 + $0x20] ss:$8 sps:$4 sm:$0xff]   ;;  %v1732_v44 = vld [vmem:[#allocation5 + $0x34] ss:$8 sps:$4 sm:$0xff]  }
  0x59   :  { %v150_v31 = vcombine.high %v2077_v25, %v2080_v26  ;;  %v221_v33 = vcombine.high %v2083_v27, %v2086_v30  ;;  %884 = vmatprep.subr.bf16.mxu1 %v1720_v37  ;;  %v1684_v45 = vld [vmem:[#allocation5 + $0x1a0] ss:$8 sps:$4 sm:$0xff]   ;;  %v1685_v46 = vld [vmem:[#allocation5 + $0x1b4] ss:$8 sps:$4 sm:$0xff]   ;;  %v1737_v47 = vld [vmem:[#allocation5 + $0x30] ss:$8 sps:$4 sm:$0xff]   ;;  %v149_v1 = vcombine.low %v2077_v25, %v2080_v26  ;;  %v220_v2 = vcombine.low %v2083_v27, %v2086_v30 }
  0x5a   :  { %v1738_v48 = vld [vmem:[#allocation5 + $0x44] ss:$8 sps:$4 sm:$0xff]   ;;  %v1687_v49 = vld [vmem:[#allocation5 + $0x1b0] ss:$8 sps:$4 sm:$0xff]   ;;  %v1743_v51 = vld [vmem:[#allocation5 + $0x40] ss:$8 sps:$4 sm:$0xff]  }
  0x5b   :  { %932 = vmatpush1.bf16.msra.mxu0 %v1663_v7  ;;  %v274_v36 = vpack.c.bf16 %v221_v33, %v150_v31  ;;  %v1688_v50 = vld [vmem:[#allocation5 + $0x1c4] ss:$8 sps:$4 sm:$0xff]   ;;  %v1744_v52 = vld [vmem:[#allocation5 + $0x54] ss:$8 sps:$4 sm:$0xff]   ;;  %v1690_v53 = vld [vmem:[#allocation5 + $0x1c0] ss:$8 sps:$4 sm:$0xff]   ;;  %v273_v7 = vpack.c.bf16 %v220_v2, %v149_v1 }
  0x5c   :  { %933 = vmatprep.subr.bf16.mxu0 %v1664_v8  ;;  %885 = vmatpush1.bf16.msra.mxu1 %v1725_v39  ;;  %v1691_v54 = vld [vmem:[#allocation5 + $0x1d4] ss:$8 sps:$4 sm:$0xff]   ;;  %v1749_v55 = vld [vmem:[#allocation5 + $0x50] ss:$8 sps:$4 sm:$0xff]   ;;  %v1750_v56 = vld [vmem:[#allocation5 + $0x64] ss:$8 sps:$4 sm:$0xff]  }
  0x5d   :  { %957 = vmatprep.mubr.bf16.mxu0 %v274_v36  ;;  %886 = vmatprep.subr.bf16.mxu1 %v1726_v40  ;;  %v1693_v57 = vld [vmem:[#allocation5 + $0x1d0] ss:$8 sps:$4 sm:$0xff]   ;;  %v1694_v58 = vld [vmem:[#allocation5 + $0x1e4] ss:$8 sps:$4 sm:$0xff]   ;;  %v1755_v59 = vld [vmem:[#allocation5 + $0x60] ss:$8 sps:$4 sm:$0xff]  }
  0x5e   :  { %v1756_v60 = vld [vmem:[#allocation5 + $0x74] ss:$8 sps:$4 sm:$0xff]   ;;  %v1696_v61 = vld [vmem:[#allocation5 + $0x1e0] ss:$8 sps:$4 sm:$0xff]   ;;  %v1761_v63 = vld [vmem:[#allocation5 + $0x70] ss:$8 sps:$4 sm:$0xff]  }
  0x5f   :  { %934 = vmatpush1.bf16.msra.mxu0 %v1666_v12  ;;  %v1697_v62 = vld [vmem:[#allocation5 + $0x1f4] ss:$8 sps:$4 sm:$0xff]   ;;  %v1762_v0 = vld [vmem:[#allocation5 + $0x84] ss:$8 sps:$4 sm:$0xff]   ;;  %v1699_v3 = vld [vmem:[#allocation5 + $0x1f0] ss:$8 sps:$4 sm:$0xff]  }
  0x60   :  { %935 = vmatprep.subr.bf16.mxu0 %v1667_v13  ;;  %887 = vmatpush1.bf16.msra.mxu1 %v1731_v43  ;;  %v1710_v4 = vld [vmem:[#allocation5 + $0x204] ss:$8 sps:$4 sm:$0xff]   ;;  %v1767_v5 = vld [vmem:[#allocation5 + $0x80] ss:$8 sps:$4 sm:$0xff]   ;;  %v1768_v6 = vld [vmem:[#allocation5 + $0x94] ss:$8 sps:$4 sm:$0xff]  }
  0x61   :  { %888 = vmatprep.subr.bf16.mxu1 %v1732_v44  ;;  %v1708_v8 = vld [vmem:[#allocation5 + $0x200] ss:$8 sps:$4 sm:$0xff]   ;;  %v1713_v9 = vld [vmem:[#allocation5 + $0x214] ss:$8 sps:$4 sm:$0xff]   ;;  %v1773_v10 = vld [vmem:[#allocation5 + $0x90] ss:$8 sps:$4 sm:$0xff]  }
  0x62   :  { %v1711_v11 = vld [vmem:[#allocation5 + $0x210] ss:$8 sps:$4 sm:$0xff]   ;;  %v1774_v12 = vld [vmem:[#allocation5 + $0xa4] ss:$8 sps:$4 sm:$0xff]   ;;  %v1779_v14 = vld [vmem:[#allocation5 + $0xa0] ss:$8 sps:$4 sm:$0xff]  }
  0x63   :  { %936 = vmatpush1.bf16.msra.mxu0 %v1669_v16  ;;  %v1718_v13 = vld [vmem:[#allocation5 + $0x224] ss:$8 sps:$4 sm:$0xff]   ;;  %v1804_v21 = vld [vmem:[#allocation2 + $0x40] ss:$14 sps:$4 sm:$0xff]   ;;  %v1821_v36 = vld [vmem:[#allocation2 + $0x38] ss:$14 sps:$4 sm:$0xff]  }
  0x64   :  { %937 = vmatprep.subr.bf16.mxu0 %v1670_v17  ;;  %889 = vmatpush1.bf16.msra.mxu1 %v1737_v47  ;;  %v1798_v16 = vld [vmem:[#allocation2 + $0x8] ss:$14 sps:$4 sm:$0xff]   ;;  %v1780_v17 = vld [vmem:[#allocation5 + $0xb4] ss:$8 sps:$4 sm:$0xff]   ;;  %v2103_v27 = vrot.slane %v1804_v21, %v2074_v20  ;;  %v196_v43 = vrot.slane %v1821_v36, %v2074_v20 }
  0x65   :  { %890 = vmatprep.subr.bf16.mxu1 %v1738_v48  ;;  %v1716_v22 = vld [vmem:[#allocation5 + $0x220] ss:$8 sps:$4 sm:$0xff]   ;;  %v1807_v24 = vld [vmem:[#allocation2 + $0x5c] ss:$14 sps:$4 sm:$0xff]   ;;  %v1822_v37 = vld [vmem:[#allocation2 + $0x54] ss:$14 sps:$4 sm:$0xff]  }
  0x66   :  { %v1724_v25 = vld [vmem:[#allocation5 + $0x234] ss:$8 sps:$4 sm:$0xff]   ;;  %v1785_v26 = vld [vmem:[#allocation5 + $0xb0] ss:$8 sps:$4 sm:$0xff]   ;;  %v2108_v30 = vrot.slane %v1807_v24, %v2074_v20  ;;  %v1730_v32 = vld [vmem:[#allocation5 + $0x244] ss:$8 sps:$4 sm:$0xff]  }
  0x67   :  { %938 = vmatpush1.bf16.msra.mxu0 %v1672_v18  ;;  %v1801_v18 = vld [vmem:[#allocation2 + $0x24] ss:$14 sps:$4 sm:$0xff]   ;;  %v1722_v31 = vld [vmem:[#allocation5 + $0x230] ss:$8 sps:$4 sm:$0xff]  }
  0x68   :  { %939 = vmatprep.subr.bf16.mxu0 %v1673_v19  ;;  %891 = vmatpush1.bf16.msra.mxu1 %v1743_v51  ;;  %v2097_v19 = vrot.slane %v1798_v16, %v2074_v20  ;;  %v2100_v23 = vrot.slane %v1801_v18, %v2074_v20  ;;  %v1819_v33 = vld [vmem:[#allocation2] ss:$14 sps:$4 sm:$0xff]   ;;  %v1820_v35 = vld [vmem:[#allocation2 + $0x1c] ss:$14 sps:$4 sm:$0xff]  }
  0x69   :  { %892 = vmatprep.subr.bf16.mxu1 %v1744_v52  ;;  %v125_v39 = vrot.slane %v1819_v33, %v2074_v20  ;;  %v1792_v40 = vld [vmem:[#allocation5 + $0xd4] ss:$8 sps:$4 sm:$0xff]   ;;  %v1728_v44 = vld [vmem:[#allocation5 + $0x240] ss:$8 sps:$4 sm:$0xff]   ;;  %v1797_v48 = vld [vmem:[#allocation5 + $0xd0] ss:$8 sps:$4 sm:$0xff]  }
  0x6a   :  { %v1734_v51 = vld [vmem:[#allocation5 + $0x250] ss:$8 sps:$4 sm:$0xff]   ;;  %v1776_v18 = vld [vmem:[#allocation5 + $0x2c0] ss:$8 sps:$4 sm:$0xff]   ;;  %v1784_v21 = vld [vmem:[#allocation5 + $0x2d4] ss:$8 sps:$4 sm:$0xff]  }
  0x6b   :  { %940 = vmatpush1.bf16.msra.mxu0 %v1675_v28  ;;  %v1786_v28 = vld [vmem:[#allocation5 + $0xc4] ss:$8 sps:$4 sm:$0xff]   ;;  %v1825_v2 = vld [vmem:[#allocation7 + $0x48] sm:$0xff]  }
  0x6c   :  { %941 = vmatprep.subr.bf16.mxu0 %v1676_v29  ;;  %893 = vmatpush1.bf16.msra.mxu1 %v1749_v55  ;;  %v184_v29 = vcombine.high %v2097_v19, %v2100_v23  ;;  %v1740_v55 = vld [vmem:[#allocation5 + $0x260] ss:$8 sps:$4 sm:$0xff]   ;;  %v1770_v16 = vld [vmem:[#allocation5 + $0x2b0] ss:$8 sps:$4 sm:$0xff]   ;;  %v1790_v24 = vld [vmem:[#allocation5 + $0x2e4] ss:$8 sps:$4 sm:$0xff]  }
  0x6d   :  { %894 = vmatprep.subr.bf16.mxu1 %v1750_v56  ;;  %v1816_v56 = vld [vmem:[#allocation5 + $0xf4] ss:$8 sps:$4 sm:$0xff]  }
  0x6e   :  { %v1800_v33 = vld [vmem:[#allocation2 + $0xc] ss:$14 sps:$4 sm:$0x33]   ;;  %v1809_v36 = vld [vmem:[#allocation2 + $0x60] ss:$14 sps:$4 sm:$0x33]  }
  0x6f   :  { %942 = vmatpush1.bf16.msra.mxu0 %v1678_v34  ;;  %v255_v34 = vcombine.high %v2103_v27, %v2108_v30 }
  0x70   :  { %943 = vmatprep.subr.bf16.mxu0 %v1679_v38  ;;  %895 = vmatpush1.bf16.msra.mxu1 %v1755_v59  ;;  %v1791_v38 = vld [vmem:[#allocation5 + $0xc0] ss:$8 sps:$4 sm:$0xff]  }
  0x71   :  { %896 = vmatprep.subr.bf16.mxu1 %v1756_v60 }
  0x73   :  { %944 = vmatpush1.bf16.msra.mxu0 %v1681_v41  ;;  %v276_v41 = vpack.c.bf16 %v255_v34, %v184_v29  ;;  %v254_v29 = vcombine.low %v2103_v27, %v2108_v30  ;;  %v1803_v34 = vld [vmem:[#allocation2 + $0x28] ss:$14 sps:$4 sm:$0x33]   ;;  %v1976_v27 = vmov 0  }
  0x74   :  { %945 = vmatprep.subr.bf16.mxu0 %v1682_v42  ;;  %897 = vmatpush1.bf16.msra.mxu1 %v1761_v63  ;;  %v139_v42 = vrot.slane %v1820_v35, %v2074_v20  ;;  %v1754_v63 = vld [vmem:[#allocation5 + $0x284] ss:$8 sps:$4 sm:$0xff]   ;;  %v1806_v35 = vld [vmem:[#allocation2 + $0x44] ss:$14 sps:$4 sm:$0x33]  }
  0x75   :  { %898 = vmatprep.subr.bf16.mxu1 %v1762_v0  ;;  %v1824_v0 = vld [vmem:[#allocation7] sm:$0xff]  }
  0x76   :  { %v148_v47 = vcombine.high %v125_v39, %v139_v42  ;;  %v147_v59 = vcombine.low %v125_v39, %v139_v42  ;;  %v168_v39 = vrot.slane %v1800_v33, %v2074_v20 }
  0x77   :  { %946 = vmatpush1.bf16.msra.mxu0 %v1684_v45  ;;  %v210_v45 = vrot.slane %v1822_v37, %v2074_v20 }
  0x78   :  { %947 = vmatprep.subr.bf16.mxu0 %v1685_v46  ;;  %899 = vmatpush1.bf16.msra.mxu1 %v1767_v5  ;;  %v1736_v46 = vld [vmem:[#allocation5 + $0x254] ss:$8 sps:$4 sm:$0xff]  }
  0x79   :  { %900 = vmatprep.subr.bf16.mxu1 %v1768_v6  ;;  %v218_v60 = vcombine.low %v196_v43, %v210_v45  ;;  %v1826_v5 = vld [vmem:[#allocation7 + $0x8] sm:$0xff]   ;;  %v1827_v6 = vld [vmem:[#allocation7 + $0x50] sm:$0xff]  }
  0x7b   :  { %948 = vmatpush1.bf16.msra.mxu0 %v1687_v49  ;;  %v219_v49 = vcombine.high %v196_v43, %v210_v45  ;;  %v271_v1 = vpack.c.bf16 %v218_v60, %v147_v59  ;;  %v1832_v43 = vld [vmem:[#allocation7 + $0x20] sm:$0xff]   ;;  %v1834_v45 = vld [vmem:[#allocation7 + $0x28] sm:$0xff]  }
  0x7c   :  { %949 = vmatprep.subr.bf16.mxu0 %v1688_v50  ;;  %901 = vmatpush1.bf16.msra.mxu1 %v1773_v10  ;;  %v1810_v50 = vld [vmem:[#allocation5 + $0xe4] ss:$8 sps:$4 sm:$0xff]  }
  0x7d   :  { %902 = vmatprep.subr.bf16.mxu1 %v1774_v12  ;;  %v272_v52 = vpack.c.bf16 %v219_v49, %v148_v47  ;;  %v1829_v10 = vld [vmem:[#allocation7 + $0x58] sm:$0xff]   ;;  %v1772_v12 = vld [vmem:[#allocation5 + $0x2b4] ss:$8 sps:$4 sm:$0xff]   ;;  %v1836_v47 = vld [vmem:[#allocation7 + $0x30] sm:$0xff]   ;;  %v1977_v49 = vmov 0.0  }
  0x7f   :  { %950 = vmatpush1.bf16.msra.mxu0 %v1690_v53  ;;  %v1742_v53 = vld [vmem:[#allocation5 + $0x264] ss:$8 sps:$4 sm:$0xff]   ;;  %914 = vmatprep.mubr.bf16.mxu1 %v272_v52 }
  0x80   :  { %951 = vmatprep.subr.bf16.mxu0 %v1691_v54  ;;  %903 = vmatpush1.bf16.msra.mxu1 %v1779_v14  ;;  %v1815_v54 = vld [vmem:[#allocation5 + $0xe0] ss:$8 sps:$4 sm:$0xff]   ;;  %v1831_v14 = vld [vmem:[#allocation7 + $0x60] sm:$0xff]  }
  0x81   :  { %904 = vmatprep.subr.bf16.mxu1 %v1780_v17  ;;  %v1778_v17 = vld [vmem:[#allocation5 + $0x2c4] ss:$8 sps:$4 sm:$0xff]  }
  0x83   :  { %952 = vmatpush1.bf16.msra.mxu0 %v1693_v57  ;;  %v1748_v57 = vld [vmem:[#allocation5 + $0x274] ss:$8 sps:$4 sm:$0xff]  }
  0x84   :  { %953 = vmatprep.subr.bf16.mxu0 %v1694_v58  ;;  %905 = vmatpush1.bf16.msra.mxu1 %v1785_v26  ;;  %v1818_v58 = vld [vmem:[#allocation5 + $0xf0] ss:$8 sps:$4 sm:$0xff]   ;;  %v1796_v26 = vld [vmem:[#allocation5 + $0x2f4] ss:$8 sps:$4 sm:$0xff]  }
  0x85   :  { %906 = vmatprep.subr.bf16.mxu1 %v1786_v28  ;;  %v183_v28 = vcombine.low %v2097_v19, %v2100_v23  ;;  %v239_v19 = vrot.slane %v1806_v35, %v2074_v20  ;;  %v253_v23 = vrot.slane %v1809_v36, %v2074_v20 }
  0x87   :  { %954 = vmatpush1.bf16.msra.mxu0 %v1696_v61  ;;  %v1823_v61 = vld [vmem:[#allocation7 + $0x40] sm:$0xff]   ;;  %v275_v37 = vpack.c.bf16 %v254_v29, %v183_v28 }
  0x88   :  { %955 = vmatprep.subr.bf16.mxu0 %v1697_v62  ;;  %907 = vmatpush1.bf16.msra.mxu1 %v1791_v38  ;;  %v1746_v62 = vld [vmem:[#allocation5 + $0x270] ss:$8 sps:$4 sm:$0xff]   ;;  %v1812_v38 = vld [vmem:[#allocation5 + $0x300] ss:$8 sps:$4 sm:$0xff]  }
  0x89   :  { %908 = vmatprep.subr.bf16.mxu1 %v1792_v40  ;;  %v182_v40 = vrot.slane %v1803_v34, %v2074_v20  ;;  %v1837_v20 = vld [vmem:[#allocation7 + $0x78] sm:$0xff]  }
  0x8b   :  { %956 = vmatpush1.bf16.msra.mxu0 %v1699_v3  ;;  %v1752_v3 = vld [vmem:[#allocation5 + $0x280] ss:$8 sps:$4 sm:$0xff]   ;;  %v185_v30 = vcombine.low %v168_v39, %v182_v40  ;;  %v1979_v39 = vmov 1966171168  }
  0x8c   :  { %968 = vmatprep.subr.bf16.mxu0 %v1710_v4  ;;  %909 = vmatpush1.bf16.msra.mxu1 %v1797_v48  ;;  %v1760_v4 = vld [vmem:[#allocation5 + $0x294] ss:$8 sps:$4 sm:$0xff]   ;;  %v1838_v48 = vld [vmem:[#allocation7 + $0x38] sm:$0xff]   ;;  %v1355_v40 = vunpack.c.l.s4 %v1979_v39 }
  0x8d   :  { %910 = vmatprep.subr.bf16.mxu1 %v1810_v50 }
  0x8e   :  { %958 = vmatmul.mubr.bf16.vlgmr.msra.gmra.mrb[0].mxu0 %v273_v7  ;;  %v1758_v7 = vld [vmem:[#allocation5 + $0x290] ss:$8 sps:$4 sm:$0xff]  }
  0x8f   :  { %969 = vmatpush1.bf16.msra.mxu0 %v1708_v8  ;;  %1000 = vmatprep.mubr.bf16.mxu0 %v276_v41  ;;  %v1766_v8 = vld [vmem:[#allocation5 + $0x2a4] ss:$8 sps:$4 sm:$0xff]   ;;  %v256_v41 = vcombine.low %v239_v19, %v253_v23  ;;  %v1356_v19 = vunpack.c.0.s8 %v1355_v40  ;;  %v1553_v23 = vld [vmem:[%s2154_s6] ss:$0 sm:$0xff] }
  0x90   :  { %970 = vmatprep.subr.bf16.mxu0 %v1713_v9  ;;  %911 = vmatpush1.bf16.msra.mxu1 %v1815_v54  ;;  %v1828_v9 = vld [vmem:[#allocation7 + $0x10] sm:$0xff]   ;;  %v380_v54 = vsub.s32 0, %v2071_v15 }
  0x91   :  { %912 = vmatprep.subr.bf16.mxu1 %v1816_v56  ;;  %v277_v42 = vpack.c.bf16 %v256_v41, %v185_v30  ;;  %v384_v56 = vsub.s32 1, %v2071_v15 }
  0x93   :  { %971 = vmatpush1.bf16.msra.mxu0 %v1711_v11  ;;  %v1764_v11 = vld [vmem:[#allocation5 + $0x2a0] ss:$8 sps:$4 sm:$0xff]  }
  0x94   :  { %972 = vmatprep.subr.bf16.mxu0 %v1718_v13  ;;  %913 = vmatpush1.bf16.msra.mxu1 %v1818_v58  ;;  %v1830_v13 = vld [vmem:[#allocation7 + $0x18] sm:$0xff]  }
  0x95   :  { %1567 = vmatprep.subr.bf16.mxu1 %v1823_v61 }
  0x97   :  { %973 = vmatpush1.bf16.msra.mxu0 %v1716_v22  ;;  %915 = vmatmul.mubr.bf16.vlgmr.msra.gmra.mrb[0].mxu1 %v271_v1  ;;  %v1782_v22 = vld [vmem:[#allocation5 + $0x2d0] ss:$8 sps:$4 sm:$0xff]  }
  0x98   :  { %974 = vmatprep.subr.bf16.mxu0 %v1724_v25  ;;  %1568 = vmatpush3.bf16.msra.mxu1 %v1824_v0  ;;  %v1788_v25 = vld [vmem:[#allocation5 + $0x2e0] ss:$8 sps:$4 sm:$0xff]  }
  0x99   :  { %1569 = vmatprep.subr.bf16.mxu1 %v1825_v2 }
  0x9b   :  { %975 = vmatpush1.bf16.msra.mxu0 %v1722_v31  ;;  %v1794_v31 = vld [vmem:[#allocation5 + $0x2f0] ss:$8 sps:$4 sm:$0xff]  }
  0x9c   :  { %976 = vmatprep.subr.bf16.mxu0 %v1730_v32  ;;  %1570 = vmatpush3.bf16.msra.mxu1 %v1826_v5  ;;  %v1814_v32 = vld [vmem:[#allocation5 + $0x304] ss:$8 sps:$4 sm:$0xff]  }
  0x9d   :  { %1571 = vmatprep.subr.bf16.mxu1 %v1827_v6 }
  0x9f   :  { %977 = vmatpush1.bf16.msra.mxu0 %v1728_v44  ;;  %v1833_v44 = vld [vmem:[#allocation7 + $0x68] sm:$0xff]  }
  0xa0   :  { %978 = vmatprep.subr.bf16.mxu0 %v1736_v46  ;;  %1572 = vmatpush3.bf16.msra.mxu1 %v1828_v9  ;;  %v1835_v46 = vld [vmem:[#allocation7 + $0x70] sm:$0xff]  }
  0xa1   :  { %1573 = vmatprep.subr.bf16.mxu1 %v1829_v10 }
  0xa3   :  { %979 = vmatpush1.bf16.msra.mxu0 %v1734_v51 }
  0xa4   :  { %980 = vmatprep.subr.bf16.mxu0 %v1742_v53  ;;  %1574 = vmatpush3.bf16.msra.mxu1 %v1830_v13  ;;  %v1839_v13 = vld [vmem:[#allocation8] sm:$0xff]  }
  0xa5   :  { %1575 = vmatprep.subr.bf16.mxu1 %v1831_v14  ;;  %v1840_v14 = vld [vmem:[#allocation8 + $0x8] sm:$0xff]  }
  0xa7   :  { %981 = vmatpush1.bf16.msra.mxu0 %v1740_v55  ;;  %v376_v55 = vld [vmem:[%s2150_s2] sm:$0x3] }
  0xa8   :  { %982 = vmatprep.subr.bf16.mxu0 %v1748_v57  ;;  %1576 = vmatpush3.bf16.msra.mxu1 %v1832_v43  ;;  %v381_v57 = vrot.slane %v376_v55, %v380_v54  ;;  %v385_v58 = vrot.slane %v376_v55, %v384_v56 }
  0xa9   :  { %1577 = vmatprep.subr.bf16.mxu1 %v1833_v44  ;;  %v1359_v44 = vsub.s32 %v1356_v19, %v2071_v15 }
  0xab   :  { %983 = vmatpush1.bf16.msra.mxu0 %v1746_v62 }
  0xac   :  { %984 = vmatprep.subr.bf16.mxu0 %v1754_v63  ;;  %1578 = vmatpush3.bf16.msra.mxu1 %v1834_v45 }
  0xad   :  { %1579 = vmatprep.subr.bf16.mxu1 %v1835_v46 }
  0xaf   :  { %985 = vmatpush1.bf16.msra.mxu0 %v1752_v3 }
  0xb0   :  { %986 = vmatprep.subr.bf16.mxu0 %v1760_v4  ;;  %1580 = vmatpush3.bf16.msra.mxu1 %v1836_v47 }
  0xb1   :  { %1581 = vmatprep.subr.bf16.mxu1 %v1837_v20 }
  0xb3   :  { %987 = vmatpush1.bf16.msra.mxu0 %v1758_v7 }
  0xb4   :  { %988 = vmatprep.subr.bf16.mxu0 %v1766_v8  ;;  %1582 = vmatpush3.bf16.msra.mxu1 %v1838_v48 }
  0xb5   :  { %1598 = vmatprep.subr.bf16.mxu1 %v1977_v49 }
  0xb7   :  { %989 = vmatpush1.bf16.msra.mxu0 %v1764_v11 }
  0xb8   :  { %990 = vmatprep.subr.bf16.mxu0 %v1772_v12 }
  0xbb   :  { %991 = vmatpush1.bf16.msra.mxu0 %v1770_v16  ;;  %v1841_v16 = vld [vmem:[#allocation8 + $0x10] sm:$0xff]  }
  0xbc   :  { %992 = vmatprep.subr.bf16.mxu0 %v1778_v17  ;;  %v1842_v17 = vld [vmem:[#allocation8 + $0x18] sm:$0xff]  }
  0xbf   :  { %993 = vmatpush1.bf16.msra.mxu0 %v1776_v18  ;;  %v1843_v18 = vld [vmem:[#allocation8 + $0x20] sm:$0xff]  }
  0xc0   :  { %994 = vmatprep.subr.bf16.mxu0 %v1784_v21  ;;  %v1844_v21 = vld [vmem:[#allocation8 + $0x28] sm:$0xff]  }
  0xc3   :  { %995 = vmatpush1.bf16.msra.mxu0 %v1782_v22  ;;  %v1845_v22 = vld [vmem:[#allocation8 + $0x30] sm:$0xff]  }
  0xc4   :  { %996 = vmatprep.subr.bf16.mxu0 %v1790_v24  ;;  %v1846_v24 = vld [vmem:[#allocation8 + $0x38] sm:$0xff]  }
  0xc7   :  { %997 = vmatpush1.bf16.msra.mxu0 %v1788_v25 }
  0xc8   :  { %998 = vmatprep.subr.bf16.mxu0 %v1796_v26  ;;  %v1536_v26 = vld [vmem:[%s2152_s4] ss:$0 sm:$0xff] }
  0xcb   :  { %999 = vmatpush1.bf16.msra.mxu0 %v1794_v31 }
  0xcc   :  { %1011 = vmatprep.subr.bf16.mxu0 %v1814_v32 }
  0xce   :  { %1001 = vmatmul.mubr.bf16.vlgmr.msra.gmra.mrb[0].mxu0 %v275_v37 }
  0xcf   :  { %1012 = vmatpush1.bf16.msra.mxu0 %v1812_v38  ;;  %1043 = vmatprep.mubr.bf16.mxu0 %v1976_v27 }
  0xda   :  { %1535 = vmatmul.mubr.msk.bf16.vlgmr.msra.gmra.mrb[0].mxu0 %vm878_vm0, %v277_v42 }
 0x16a   :  { %v916_v50 = vpop.f32.mrb[0].mxu1 }
 0x16b   :  { %v918_v51 = vpop.f32.mrb[1].mxu1  ;;  %v917_v59 = vadd.f32 %v916_v50, %v381_v57 }
 0x16c   :  { %v920_v52 = vpop.f32.mrb[2].mxu1  ;;  %v919_v60 = vadd.f32 %v918_v51, %v385_v58 }
 0x16d   :  { %v922_v53 = vpop.f32.mrb[3].mxu1  ;;  %v921_v62 = vadd.f32 %v920_v52, %v381_v57 }
 0x16e   :  { %v923_v1 = vadd.f32 %v922_v53, %v385_v58 }
 0x1ad   :  { %v1045_v61 = vpop.f32.mrb[0].mxu0 }
 0x1ae   :  { %v1619_v63 = vadd.f32 %v1045_v61, %v917_v59  ;;  %v1047_v0 = vpop.f32.mrb[1].mxu0 }
 0x1af   :  { %v1621_v2 = vadd.f32 %v1047_v0, %v919_v60  ;;  %v1049_v3 = vpop.f32.mrb[2].mxu0 }
 0x1b0   :  { %v1623_v4 = vadd.f32 %v1049_v3, %v921_v62  ;;  %v1051_v5 = vpop.f32.mrb[3].mxu0  ;;  %v1054_v7 = vmax.f32 %v1619_v63, 0.0 }
 0x1b1   :  { %v1625_v6 = vadd.f32 %v1051_v5, %v923_v1  ;;  %v1055_v9 = vmax.f32 %v1621_v2, 0.0 }
 0x1b2   :  { %v1056_v8 = vmax.f32 %v1623_v4, 0.0 }
 0x1b3   :  { %v1057_v10 = vmax.f32 %v1625_v6, 0.0 }
 0x1b4   :  { %v1058_v11 = vpack.c.bf16 %v1056_v8, %v1054_v7 }
 0x1b5   :  { %v1059_v12 = vpack.c.bf16 %v1057_v10, %v1055_v9 }
 0x1b7   :  { %1227 = vmatprep.mubr.bf16.mxu1 %v1059_v12 }
 0x1b8   :  { %1228 = vmatmul.mubr.bf16.vlgmr.msra.gmra.mrb[4].mxu1 %v1058_v11 }
 0x1b9   :  { %1599 = vmatpush3.bf16.msra.mxu1 %v1839_v13  ;;  %1614 = vmatprep.mubr.msk.bf16.mxu1 %vm1978_vm1, %v1977_v49 }
 0x1ba   :  { %1600 = vmatprep.subr.bf16.mxu1 %v1977_v49 }
 0x1bd   :  { %1601 = vmatpush3.bf16.msra.mxu1 %v1840_v14 }
 0x1be   :  { %1602 = vmatprep.subr.bf16.mxu1 %v1977_v49 }
 0x1c1   :  { %1603 = vmatpush3.bf16.msra.mxu1 %v1841_v16 }
 0x1c2   :  { %1604 = vmatprep.subr.bf16.mxu1 %v1977_v49 }
 0x1c5   :  { %1605 = vmatpush3.bf16.msra.mxu1 %v1842_v17 }
 0x1c6   :  { %1606 = vmatprep.subr.bf16.mxu1 %v1977_v49 }
 0x1c9   :  { %1607 = vmatpush3.bf16.msra.mxu1 %v1843_v18 }
 0x1ca   :  { %1608 = vmatprep.subr.bf16.mxu1 %v1977_v49 }
 0x1cd   :  { %1609 = vmatpush3.bf16.msra.mxu1 %v1844_v21 }
 0x1ce   :  { %1610 = vmatprep.subr.bf16.mxu1 %v1977_v49 }
 0x1d1   :  { %1611 = vmatpush3.bf16.msra.mxu1 %v1845_v22 }
 0x1d2   :  { %1612 = vmatprep.subr.bf16.mxu1 %v1977_v49 }
 0x1d5   :  { %1613 = vmatpush3.bf16.msra.mxu1 %v1846_v24 }
 0x28b   :  { %v1583_v25 = vpop.f32.mrb[4].mxu1 }
 0x28c   :  { %v1584_v28 = vpop.f32.mrb[5].mxu1 }
 0x28d   :  { %v1585_v29 = vadd.f32 %v1584_v28, %v1583_v25  ;;  %v1586_v31 = vpop.f32.mrb[6].mxu1 }
 0x28e   :  { %v1587_v32 = vpop.f32.mrb[7].mxu1 }
 0x28f   :  { %v1230_v33 = vadd.f32 %v1585_v29, %v1536_v26  ;;  %v1588_v34 = vadd.f32 %v1587_v32, %v1586_v31 }
 0x291   :  { %v1233_v35 = vadd.f32 %v1588_v34, %v1536_v26  ;;  %v1236_v36 = vmax.f32 %v1230_v33, 0.0 }
 0x293   :  { %v1237_v37 = vmax.f32 %v1233_v35, 0.0 }
 0x295   :  { %v1238_v38 = vpack.c.bf16 %v1237_v37, %v1236_v36 }
 0x297   :  { %1615 = vmatmul.mubr.bf16.vlgmr.msra.gmra.mrb[8].mxu1 %v1238_v38 }
 0x36a   :  { %v1344_v27 = vpop.f32.mrb[8].mxu1 }
 0x36b   :  { %v1616_v30 = vpop.f32.mrb[9].mxu1  ;;  %v1345_v42 = vadd.f32 %v1553_v23, %v1344_v27 }
 0x36c   :  { %v1347_v41 = vpop.f32.mrb[10].mxu1 }
 0x36d   :  { %v1348_v43 = vadd.f32 %v1553_v23, %v1347_v41  ;;  %v1617_v45 = vpop.f32.mrb[11].mxu1 }
 0x36f   :  { %v1351_v46 = vpack.c.bf16 %v1348_v43, %v1345_v42  ;;  %v1562_v47 = vpack.c.bf16 %v1348_v43, %v1348_v43 }
 0x371   :  { %v1360_v20 = vrot.slane %v1351_v46, %v1359_v44  ;;  %v1367_v48 = vrot.slane %v1562_v47, %v1359_v44 }
 0x373   :  { %v1368_v49 = vcombine.high %v1360_v20, %v1360_v20  ;;  %v1369_v50 = vcombine.high %v1367_v48, %v1367_v48  ;;  %v1376_v51 = vrot.slane %v1360_v20, %v1359_v44  ;;  %v1383_v52 = vrot.slane %v1367_v48, %v1359_v44  ;;  %1563 = vst.sshfl [vmem:[#allocation10] sm:$0x1 pattern:$0x73625140] %v1360_v20 }
 0x374   :  { %1565 = vst.sshfl [vmem:[#allocation10 + $0x4] sm:$0x1 pattern:$0x73625140] %v1367_v48 }
 0x375   :  { %v1390_v53 = vrot.slane %v1368_v49, %v1359_v44  ;;  %v1397_v54 = vrot.slane %v1369_v50, %v1359_v44  ;;  %v1398_v55 = vcombine.high %v1376_v51, %v1376_v51  ;;  %v1399_v56 = vcombine.high %v1383_v52, %v1383_v52  ;;  %1564 = vst.sshfl [vmem:[#allocation10 + $0x1] sm:$0x1 pattern:$0x73625140] %v1368_v49 }
 0x376   :  { %1566 = vst.sshfl [vmem:[#allocation10 + $0x5] sm:$0x1 pattern:$0x73625140] %v1369_v50 }
 0x377   :  { %v1400_v57 = vcombine.high %v1390_v53, %v1390_v53  ;;  %v1401_v58 = vcombine.high %v1397_v54, %v1397_v54  ;;  %1412 = vst [vmem:[#allocation10 + $0x2] sm:$0x1] %v1398_v55  ;;  %1416 = vst [vmem:[#allocation10 + $0x6] sm:$0x1] %v1399_v56 }
 0x379   :  { %1413 = vst [vmem:[#allocation10 + $0x3] sm:$0x1] %v1400_v57  ;;  %1417 = vst [vmem:[#allocation10 + $0x7] sm:$0x1] %v1401_v58 }
 0x37a   :  { %1422 = vsyncadd [#allocation4], 112  ;;  %s1980_s4 = smov [#allocation10]  }
 0x37b   :  { %s1423_s6 = sshll.u32 %s1980_s4, 4  ;;  %s1424_s6 = int_to_ptr.vmem [resolvable:$true] %s1423_s6 }
 0x37c   :  { %s1935_s10 = scalar_lea.vmem %s1424_s6, 16  ;;  %s1939_s11 = scalar_lea.vmem %s1424_s6, 128 }
 0x37d   :  { %p1936_p4 = scmp.ne.s32.totalorder %s1424_s6, %s1935_s10  ;;  %p1940_p5 = scmp.lt.s32.totalorder %s1424_s6, %s1424_s6 }
 0x37e   :  { %p1941_p6 = scmp.lt.s32.totalorder %s1939_s11, %s1935_s10 }
 0x380   :  { %p1942_p7 = por %p1941_p6, %p1940_p5 }
 0x382   :  { %p1943_p8 = pnand %p1942_p7, %p1936_p4 }
 0x384   :  { %1946 = shalt.err (!%p1943_p8)
}
 0x385   :  { %s1947_s14 = scalar_lea.hbm %s2155_s7, 16 }
 0x386   :  { %p1948_p9 = scmp.ne.s32.totalorder %s2155_s7, %s1947_s14  ;;  %p1951_p10 = scmp.lt.u32.totalorder %s1947_s14, %s2155_s7 }
 0x388   :  { %p1953_p11 = pnand %p1951_p10, %p1948_p9 }
 0x38a   :  { %1956 = shalt.err (!%p1953_p11)
}
 0x38b   :  { %s1981_s18 = smov 16   ;;  %s1982_s19 = smov 1  }
 0x38c   :  { %1429 = dma.vmem_to_hbm [thread:$0]  %s1424_s6, 16, %s2155_s7, [#allocation4], %s1981_s18, %s1981_s18, %s1982_s19  }
 0x38d   :  { %1963 = dma.done.wait [#allocation4], 128  }
 0x38e   :  { %1964 = vsyncadd [#allocation4], 4294967168 }
 0x38f   :  { %1433 = vsyncpa [#allocation3], 1 }
 0x390   :  { %1434 = vsyncpa [#allocation6], 1 }
 0x391   :  { %1435 = vsyncpa [#allocation9], 1 }
 0x392   :  { %1436 = vsyncpa [#allocation4], 1 }

</bundles_post_ra>
